<compile_context>
chip_gen: v6e
topology: v6e:2x2x1
jax: 0.10.0
libtpu: 0.0.40
codegen_flags: <defaults>
</compile_context>

<pallas_src>
import jax
import jax.numpy as jnp
import numpy as np
from jax import lax
from jax.experimental import pallas as pl
from jax.experimental.pallas import tpu as pltpu

_EPS = 1e-5
MATMUL_DTYPE = jnp.float32  # set to jnp.bfloat16 on v6e/v7x for MXU peak (looser accuracy)


def _global_block_kernel(x_ref, xv_ref,
                         wkey_ref, bkey_ref,
                         wv1t_ref, bv1_ref, gamma_ref, beta_ref,
                         wv2_ref, bv2_ref,
                         m1d_ref, wc3_ref,
                         o_ref):
    x = x_ref[0]      # (C, N)  true layout: x[b].reshape(C, N)
    xv = xv_ref[0]    # (N, C)  raw view:   x[b].flatten().reshape(N, C)  (== torch x.view(b,N,c))

    # ---------------- branch 1: spatial softmax attention ----------------
    # Conv_key: 1x1x1 conv (C -> 1), on the MXU as (1,C) @ (C,N).
    key_logits = jnp.dot(wkey_ref[...], x,
                         preferred_element_type=jnp.float32) + bkey_ref[...]       # (1, N)
    m = jnp.max(key_logits, axis=1, keepdims=True)
    e = jnp.exp(key_logits - m)
    key = e * pl.reciprocal(jnp.sum(e, axis=1, keepdims=True), approx=True)        # softmax over N

    # query @ key : (C, N) x (N, 1) -> (C, 1), on the MXU (transposed-RHS dot).
    qk = lax.dot_general(x, key, (((1,), (1,)), ((), ())),
                         preferred_element_type=jnp.float32)                        # (C, 1)

    # Conv_value[0]: 1x1x1 conv (C -> Co)  (tiny; VPU)
    v1 = jnp.sum(wv1t_ref[...] * qk, axis=0, keepdims=True) + bv1_ref[...]          # (1, Co)
    # LayerNorm([Co,1,1,1])  (tiny; two-pass kept for exactness)
    mu = jnp.mean(v1, axis=1, keepdims=True)
    var = jnp.mean((v1 - mu) ** 2, axis=1, keepdims=True)
    v1 = (v1 - mu) * lax.rsqrt(var + _EPS) * gamma_ref[...] + beta_ref[...]
    v1 = jnp.maximum(v1, 0.0)                                                        # ReLU
    # Conv_value[3]: 1x1x1 conv (Co -> C)
    value = jnp.sum(wv2_ref[...] * v1, axis=1, keepdims=True) + bv2_ref[...]         # (C, 1)

    x1 = jnp.maximum(x + value, 0.0)                                                 # relu(x + value)

    # ---------------- branch 2: channel softmax attention ----------------
    avg = jnp.mean(x, axis=1, keepdims=True)                                         # (C, 1) adaptive avg pool
    # conv_1d (k=3, pad=1, no bias) along channels, as a tridiagonal (C,C) matrix
    # built in the wrapper (tiny; mathematically identical).
    keyh_pre = jnp.sum(m1d_ref[...] * avg, axis=0, keepdims=True)                    # (1, C)
    mh = jnp.max(keyh_pre, axis=1, keepdims=True)
    eh = jnp.exp(keyh_pre - mh)
    keyh = eh * pl.reciprocal(jnp.sum(eh, axis=1, keepdims=True), approx=True)       # softmax over C

    # queryh @ keyh : torch's x.view(b,N,c) @ (C,1) -> (N,), computed directly as
    # a lane row on the MXU from the bitcast (N, C) view: (1,C) x (N,C)^T.
    qkh = lax.dot_general(keyh, xv, (((1,), (1,)), ((), ())),
                          preferred_element_type=jnp.float32)                        # (1, N)
    x2 = x + qkh

    # -------- conv3 = 1x1x1 conv (C -> C, no bias) + InstanceNorm3d --------
    y = x1 + x2
    z = jnp.dot(wc3_ref[...].astype(MATMUL_DTYPE), y.astype(MATMUL_DTYPE),
                preferred_element_type=jnp.float32)                                  # (C, N) MXU
    # single-pass statistics: var = E[z^2] - E[z]^2
    mu_c = jnp.mean(z, axis=1, keepdims=True)
    msq_c = jnp.mean(z * z, axis=1, keepdims=True)
    var_c = jnp.maximum(msq_c - mu_c * mu_c, 0.0)
    zn = (z - mu_c) * lax.rsqrt(var_c + _EPS)

    o_ref[0] = jnp.maximum(x + zn, 0.0)                                              # relu(x + out)


def global_block(x, params, *, vmem_limit_bytes=None):
    """x: (B, C, H, W, D) float32 -> (B, C, H, W, D) float32."""
    B, C, H, W, D = x.shape
    N = H * W * D
    # Two *bitcast* views of the same HBM bytes — no transpose is materialized.
    x2d = x.reshape(B, C, N)          # true (channel, spatial) layout
    xv = x.reshape(B, N, C)           # raw reinterpretation == torch x.view(b, h*w*d, c)

    plist = [params["wkey"], params["bkey"], params["wv1t"], params["bv1"],
             params["gamma"], params["beta"], params["wv2"], params["bv2"],
             params["m1d"], params["wc3"]]

    def full_spec(a):
        nd = a.ndim
        return pl.BlockSpec(a.shape, lambda b, _nd=nd: (0,) * _nd)

    if vmem_limit_bytes is None:
        # Explicit VMEM budget: double-buffered in/out blocks (xv block is lane
        # padded to 128) plus headroom for the live (C, N) f32 temporaries.
        lanes = -(-C // 128) * 128
        blk = 4 * (C * N + N * lanes + C * N)
        vmem_limit_bytes = int(min(4 * blk + (8 << 20), 64 * 1024 * 1024))

    # TODO(synk): for production 3-D volumes (e.g. C=32, 64^3 -> N=262144) add an
    # N-tiling grid axis with two-pass softmax / InstanceNorm statistics; the
    # whole-volume-per-batch block used here targets small shapes (v7x: 64 MiB VMEM).
    out = pl.pallas_call(
        _global_block_kernel,
        out_shape=jax.ShapeDtypeStruct((B, C, N), jnp.float32),
        grid=(B,),
        in_specs=[pl.BlockSpec((1, C, N), lambda b: (b, 0, 0)),
                  pl.BlockSpec((1, N, C), lambda b: (b, 0, 0))]
                 + [full_spec(p) for p in plist],
        out_specs=pl.BlockSpec((1, C, N), lambda b: (b, 0, 0)),
        compiler_params=pltpu.CompilerParams(
            dimension_semantics=("parallel",),       # batch elems independent -> v7x megacore
            vmem_limit_bytes=vmem_limit_bytes),
    )(x2d, xv, *plist)
    return out.reshape(B, C, H, W, D)


def make_params(key, C, scale=4):
    """Deterministic synthetic parameters (PyTorch-style + kernel-layout)."""
    Co = C // scale
    ks = jax.random.split(key, 10)

    def rnd(k, shape, s=0.3):
        return (s * jax.random.normal(k, shape)).astype(jnp.float32)

    wkey_pt = rnd(ks[0], (C,))          # Conv_key.weight  (1, C, 1,1,1)
    bkey_pt = rnd(ks[1], ())            # Conv_key.bias
    wv1_pt = rnd(ks[2], (Co, C))        # Conv_value[0].weight
    bv1_pt = rnd(ks[3], (Co,))
    gamma_pt = 1.0 + rnd(ks[4], (Co,), 0.1)   # LayerNorm weight
    beta_pt = rnd(ks[5], (Co,), 0.1)          # LayerNorm bias
    wv2_pt = rnd(ks[6], (C, Co))        # Conv_value[3].weight
    bv2_pt = rnd(ks[7], (C,))
    w1d_pt = rnd(ks[8], (3,))           # conv_1d.weight (1,1,3), no bias
    wc3_pt = rnd(ks[9], (C, C))         # conv3.conv.weight (bias=False)

    pt = dict(wkey=wkey_pt, bkey=bkey_pt, wv1=wv1_pt, bv1=bv1_pt,
              gamma=gamma_pt, beta=beta_pt, wv2=wv2_pt, bv2=bv2_pt,
              w1d=w1d_pt, wc3=wc3_pt)

    # tridiagonal matrix M with M[j, i] = weight of avg[j] in conv1d output i
    m1d = (w1d_pt[1] * jnp.eye(C, dtype=jnp.float32)
           + w1d_pt[0] * jnp.eye(C, k=1, dtype=jnp.float32)
           + w1d_pt[2] * jnp.eye(C, k=-1, dtype=jnp.float32))

    kern = dict(
        wkey=wkey_pt.reshape(1, C),     # row for the (1,C) @ (C,N) MXU dot
        bkey=bkey_pt.reshape(1, 1),
        wv1t=wv1_pt.T,                  # (C, Co)
        bv1=bv1_pt.reshape(1, Co),
        gamma=gamma_pt.reshape(1, Co),
        beta=beta_pt.reshape(1, Co),
        wv2=wv2_pt,                     # (C, Co)
        bv2=bv2_pt.reshape(C, 1),
        m1d=m1d,                        # (C, C)
        wc3=wc3_pt,                     # (C, C)
    )
    return pt, kern


def reference(x, p):
    """Plain-JAX re-implementation of the PyTorch forward (for verification)."""
    hp = jax.lax.Precision.HIGHEST
    B, C, H, W, D = x.shape
    N = H * W * D
    xq = x.reshape(B, C, N)

    key_logits = jnp.einsum("c,bcn->bn", p["wkey"], xq, precision=hp) + p["bkey"]
    key = jax.nn.softmax(key_logits, axis=1)
    qk = jnp.einsum("bcn,bn->bc", xq, key, precision=hp)
    v1 = jnp.einsum("oc,bc->bo", p["wv1"], qk, precision=hp) + p["bv1"]
    mu = v1.mean(-1, keepdims=True)
    var = ((v1 - mu) ** 2).mean(-1, keepdims=True)
    v1 = (v1 - mu) / jnp.sqrt(var + _EPS) * p["gamma"] + p["beta"]
    v1 = jax.nn.relu(v1)
    value = jnp.einsum("co,bo->bc", p["wv2"], v1, precision=hp) + p["bv2"]
    x1 = jax.nn.relu(xq + value[:, :, None])

    avg = xq.mean(-1)                                         # (B, C)
    pad = jnp.pad(avg, ((0, 0), (1, 1)))
    kp = (p["w1d"][0] * pad[:, :-2] + p["w1d"][1] * pad[:, 1:-1]
          + p["w1d"][2] * pad[:, 2:])
    keyh = jax.nn.softmax(kp, axis=1)                         # (B, C)
    xvw = x.reshape(B, N, C)                                  # torch x.view(b, N, c)
    qkh = jnp.einsum("bnc,bc->bn", xvw, keyh, precision=hp)
    x2 = xq + qkh[:, None, :]

    y = x1 + x2
    z = jnp.einsum("oc,bcn->bon", p["wc3"], y, precision=hp)
    mu_c = z.mean(-1, keepdims=True)
    var_c = ((z - mu_c) ** 2).mean(-1, keepdims=True)
    zn = (z - mu_c) / jnp.sqrt(var_c + _EPS)
    return jax.nn.relu(xq + zn).reshape(B, C, H, W, D)


if __name__ == "__main__":
    # in_channels=8, scale=4 -> out_channels=2; N = 8*4*4 = 128 (lane-dense stores)
    B, C, H, W, D = 2, 8, 8, 4, 4
    key = jax.random.PRNGKey(0)
    kx, kp = jax.random.split(key)
    x = jax.random.normal(kx, (B, C, H, W, D), dtype=jnp.float32)
    pt_params, kern_params = make_params(kp, C, scale=4)

    out = jax.block_until_ready(global_block(x, kern_params))
    ref = jax.block_until_ready(reference(x, pt_params))
    np.testing.assert_allclose(np.asarray(out), np.asarray(ref), rtol=5e-3, atol=5e-3)
    print("KERNEL_OK")
</pallas_src>

<mosaic_0001>
module attributes {stable_mosaic.version = 11 : i64} {
  func.func @_global_block_kernel(%arg0: i32, %arg1: memref<1x8x128xf32, #tpu.memory_space<vmem>>, %arg2: memref<1x128x8xf32, #tpu.memory_space<vmem>>, %arg3: memref<1x8xf32, #tpu.memory_space<vmem>>, %arg4: memref<1x1xf32, #tpu.memory_space<vmem>>, %arg5: memref<8x2xf32, #tpu.memory_space<vmem>>, %arg6: memref<1x2xf32, #tpu.memory_space<vmem>>, %arg7: memref<1x2xf32, #tpu.memory_space<vmem>>, %arg8: memref<1x2xf32, #tpu.memory_space<vmem>>, %arg9: memref<8x2xf32, #tpu.memory_space<vmem>>, %arg10: memref<8x1xf32, #tpu.memory_space<vmem>>, %arg11: memref<8x8xf32, #tpu.memory_space<vmem>>, %arg12: memref<8x8xf32, #tpu.memory_space<vmem>>, %arg13: memref<1x8x128xf32, #tpu.memory_space<vmem>>) attributes {dimension_semantics = [#tpu.dimension_semantics<parallel>], iteration_bounds = array<i64: 2>, scalar_prefetch = 0 : i64, scratch_operands = 0 : i64, tpu.core_type = #tpu.core_type<tc>, window_params = [{transform_indices = @transform_0, window_bounds = array<i64: 1, 8, 128>}, {transform_indices = @transform_1, window_bounds = array<i64: 1, 128, 8>}, {pipeline_mode = #tpu.pipeline_mode<synchronous>, transform_indices = @transform_2, window_bounds = array<i64: 1, 8>}, {pipeline_mode = #tpu.pipeline_mode<synchronous>, transform_indices = @transform_3, window_bounds = array<i64: 1, 1>}, {pipeline_mode = #tpu.pipeline_mode<synchronous>, transform_indices = @transform_4, window_bounds = array<i64: 8, 2>}, {pipeline_mode = #tpu.pipeline_mode<synchronous>, transform_indices = @transform_5, window_bounds = array<i64: 1, 2>}, {pipeline_mode = #tpu.pipeline_mode<synchronous>, transform_indices = @transform_6, window_bounds = array<i64: 1, 2>}, {pipeline_mode = #tpu.pipeline_mode<synchronous>, transform_indices = @transform_7, window_bounds = array<i64: 1, 2>}, {pipeline_mode = #tpu.pipeline_mode<synchronous>, transform_indices = @transform_8, window_bounds = array<i64: 8, 2>}, {pipeline_mode = #tpu.pipeline_mode<synchronous>, transform_indices = @transform_9, window_bounds = array<i64: 8, 1>}, {pipeline_mode = #tpu.pipeline_mode<synchronous>, transform_indices = @transform_10, window_bounds = array<i64: 8, 8>}, {pipeline_mode = #tpu.pipeline_mode<synchronous>, transform_indices = @transform_11, window_bounds = array<i64: 8, 8>}, {transform_indices = @transform_12, window_bounds = array<i64: 1, 8, 128>}]} {
    %c0 = arith.constant 0 : index
    %c0_0 = arith.constant 0 : index
    %c0_1 = arith.constant 0 : index
    %0 = vector.load %arg1[%c0, %c0_0, %c0_1] : memref<1x8x128xf32, #tpu.memory_space<vmem>>, vector<1x8x128xf32>
    %1 = vector.shape_cast %0 : vector<1x8x128xf32> to vector<8x128xf32>
    %c0_2 = arith.constant 0 : index
    %c0_3 = arith.constant 0 : index
    %c0_4 = arith.constant 0 : index
    %2 = vector.load %arg2[%c0_2, %c0_3, %c0_4] : memref<1x128x8xf32, #tpu.memory_space<vmem>>, vector<1x128x8xf32>
    %3 = vector.shape_cast %2 : vector<1x128x8xf32> to vector<128x8xf32>
    %c0_5 = arith.constant 0 : index
    %c0_6 = arith.constant 0 : index
    %4 = vector.load %arg3[%c0_5, %c0_6] : memref<1x8xf32, #tpu.memory_space<vmem>>, vector<1x8xf32>
    %cst = arith.constant dense<0.000000e+00> : vector<1x128xf32>
    %5 = tpu.matmul %4, %1, %cst {dimension_numbers = #tpu.dot_dimension_numbers<[1], [0], [0], [1], [0, 0, 1, 1], [], []>} : vector<1x8xf32>, vector<8x128xf32>, vector<1x128xf32> -> vector<1x128xf32>
    %c0_7 = arith.constant 0 : index
    %c0_8 = arith.constant 0 : index
    %6 = vector.load %arg4[%c0_7, %c0_8] : memref<1x1xf32, #tpu.memory_space<vmem>>, vector<1x1xf32>
    %7 = vector.broadcast %6 : vector<1x1xf32> to vector<1x128xf32>
    %8 = arith.addf %5, %7 : vector<1x128xf32>
    %cst_9 = arith.constant dense<0xFF800000> : vector<1xf32>
    %9 = vector.multi_reduction <maximumf>, %8, %cst_9 [1] : vector<1x128xf32> to vector<1xf32>
    %10 = vector.shape_cast %9 : vector<1xf32> to vector<1x1xf32>
    %11 = vector.broadcast %10 : vector<1x1xf32> to vector<1x128xf32>
    %12 = arith.subf %8, %11 : vector<1x128xf32>
    %13 = math.exp %12 : vector<1x128xf32>
    %cst_10 = arith.constant dense<0.000000e+00> : vector<1xf32>
    %14 = vector.multi_reduction <add>, %13, %cst_10 [1] : vector<1x128xf32> to vector<1xf32>
    %15 = vector.shape_cast %14 : vector<1xf32> to vector<1x1xf32>
    %16 = tpu.reciprocal %15 {approx = true} : vector<1x1xf32> -> vector<1x1xf32>
    %17 = vector.broadcast %16 : vector<1x1xf32> to vector<1x128xf32>
    %18 = arith.mulf %13, %17 : vector<1x128xf32>
    %cst_11 = arith.constant dense<0.000000e+00> : vector<8x1xf32>
    %19 = tpu.matmul %1, %18, %cst_11 {dimension_numbers = #tpu.dot_dimension_numbers<[1], [1], [0], [0], [0, 0, 1, 0], [], []>} : vector<8x128xf32>, vector<1x128xf32>, vector<8x1xf32> -> vector<8x1xf32>
    %c0_12 = arith.constant 0 : index
    %c0_13 = arith.constant 0 : index
    %20 = vector.load %arg5[%c0_12, %c0_13] : memref<8x2xf32, #tpu.memory_space<vmem>>, vector<8x2xf32>
    %21 = vector.broadcast %19 : vector<8x1xf32> to vector<8x2xf32>
    %22 = arith.mulf %20, %21 : vector<8x2xf32>
    %cst_14 = arith.constant dense<0.000000e+00> : vector<2xf32>
    %23 = vector.multi_reduction <add>, %22, %cst_14 [0] : vector<8x2xf32> to vector<2xf32>
    %24 = vector.shape_cast %23 : vector<2xf32> to vector<1x2xf32>
    %c0_15 = arith.constant 0 : index
    %c0_16 = arith.constant 0 : index
    %25 = vector.load %arg6[%c0_15, %c0_16] : memref<1x2xf32, #tpu.memory_space<vmem>>, vector<1x2xf32>
    %26 = arith.addf %24, %25 : vector<1x2xf32>
    %cst_17 = arith.constant dense<0.000000e+00> : vector<1xf32>
    %27 = vector.multi_reduction <add>, %26, %cst_17 [1] : vector<1x2xf32> to vector<1xf32>
    %28 = vector.shape_cast %27 : vector<1xf32> to vector<1x1xf32>
    %cst_18 = arith.constant 2.000000e+00 : f32
    %29 = vector.broadcast %cst_18 : f32 to vector<1x1xf32>
    %30 = arith.divf %28, %29 : vector<1x1xf32>
    %31 = vector.broadcast %30 : vector<1x1xf32> to vector<1x2xf32>
    %32 = arith.subf %26, %31 : vector<1x2xf32>
    %33 = arith.mulf %32, %32 : vector<1x2xf32>
    %cst_19 = arith.constant dense<0.000000e+00> : vector<1xf32>
    %34 = vector.multi_reduction <add>, %33, %cst_19 [1] : vector<1x2xf32> to vector<1xf32>
    %35 = vector.shape_cast %34 : vector<1xf32> to vector<1x1xf32>
    %cst_20 = arith.constant 2.000000e+00 : f32
    %36 = vector.broadcast %cst_20 : f32 to vector<1x1xf32>
    %37 = arith.divf %35, %36 : vector<1x1xf32>
    %38 = vector.broadcast %30 : vector<1x1xf32> to vector<1x2xf32>
    %39 = arith.subf %26, %38 : vector<1x2xf32>
    %cst_21 = arith.constant 9.99999974E-6 : f32
    %40 = vector.broadcast %cst_21 : f32 to vector<1x1xf32>
    %41 = arith.addf %37, %40 : vector<1x1xf32>
    %42 = math.rsqrt %41 : vector<1x1xf32>
    %43 = vector.broadcast %42 : vector<1x1xf32> to vector<1x2xf32>
    %44 = arith.mulf %39, %43 : vector<1x2xf32>
    %c0_22 = arith.constant 0 : index
    %c0_23 = arith.constant 0 : index
    %45 = vector.load %arg7[%c0_22, %c0_23] : memref<1x2xf32, #tpu.memory_space<vmem>>, vector<1x2xf32>
    %46 = arith.mulf %44, %45 : vector<1x2xf32>
    %c0_24 = arith.constant 0 : index
    %c0_25 = arith.constant 0 : index
    %47 = vector.load %arg8[%c0_24, %c0_25] : memref<1x2xf32, #tpu.memory_space<vmem>>, vector<1x2xf32>
    %48 = arith.addf %46, %47 : vector<1x2xf32>
    %cst_26 = arith.constant 0.000000e+00 : f32
    %49 = vector.broadcast %cst_26 : f32 to vector<1x2xf32>
    %50 = arith.maximumf %48, %49 : vector<1x2xf32>
    %c0_27 = arith.constant 0 : index
    %c0_28 = arith.constant 0 : index
    %51 = vector.load %arg9[%c0_27, %c0_28] : memref<8x2xf32, #tpu.memory_space<vmem>>, vector<8x2xf32>
    %52 = vector.broadcast %50 : vector<1x2xf32> to vector<8x2xf32>
    %53 = arith.mulf %51, %52 : vector<8x2xf32>
    %cst_29 = arith.constant dense<0.000000e+00> : vector<8xf32>
    %54 = vector.multi_reduction <add>, %53, %cst_29 [1] : vector<8x2xf32> to vector<8xf32>
    %55 = vector.shape_cast %54 : vector<8xf32> to vector<8x1xf32>
    %c0_30 = arith.constant 0 : index
    %c0_31 = arith.constant 0 : index
    %56 = vector.load %arg10[%c0_30, %c0_31] : memref<8x1xf32, #tpu.memory_space<vmem>>, vector<8x1xf32>
    %57 = arith.addf %55, %56 : vector<8x1xf32>
    %58 = vector.broadcast %57 : vector<8x1xf32> to vector<8x128xf32>
    %59 = arith.addf %1, %58 : vector<8x128xf32>
    %cst_32 = arith.constant 0.000000e+00 : f32
    %60 = vector.broadcast %cst_32 : f32 to vector<8x128xf32>
    %61 = arith.maximumf %59, %60 : vector<8x128xf32>
    %cst_33 = arith.constant dense<0.000000e+00> : vector<8xf32>
    %62 = vector.multi_reduction <add>, %1, %cst_33 [1] : vector<8x128xf32> to vector<8xf32>
    %63 = vector.shape_cast %62 : vector<8xf32> to vector<8x1xf32>
    %cst_34 = arith.constant 1.280000e+02 : f32
    %64 = vector.broadcast %cst_34 : f32 to vector<8x1xf32>
    %65 = arith.divf %63, %64 : vector<8x1xf32>
    %c0_35 = arith.constant 0 : index
    %c0_36 = arith.constant 0 : index
    %66 = vector.load %arg11[%c0_35, %c0_36] : memref<8x8xf32, #tpu.memory_space<vmem>>, vector<8x8xf32>
    %67 = vector.broadcast %65 : vector<8x1xf32> to vector<8x8xf32>
    %68 = arith.mulf %66, %67 : vector<8x8xf32>
    %cst_37 = arith.constant dense<0.000000e+00> : vector<8xf32>
    %69 = vector.multi_reduction <add>, %68, %cst_37 [0] : vector<8x8xf32> to vector<8xf32>
    %70 = vector.shape_cast %69 : vector<8xf32> to vector<1x8xf32>
    %cst_38 = arith.constant dense<0xFF800000> : vector<1xf32>
    %71 = vector.multi_reduction <maximumf>, %70, %cst_38 [1] : vector<1x8xf32> to vector<1xf32>
    %72 = vector.shape_cast %71 : vector<1xf32> to vector<1x1xf32>
    %73 = vector.broadcast %72 : vector<1x1xf32> to vector<1x8xf32>
    %74 = arith.subf %70, %73 : vector<1x8xf32>
    %75 = math.exp %74 : vector<1x8xf32>
    %cst_39 = arith.constant dense<0.000000e+00> : vector<1xf32>
    %76 = vector.multi_reduction <add>, %75, %cst_39 [1] : vector<1x8xf32> to vector<1xf32>
    %77 = vector.shape_cast %76 : vector<1xf32> to vector<1x1xf32>
    %78 = tpu.reciprocal %77 {approx = true} : vector<1x1xf32> -> vector<1x1xf32>
    %79 = vector.broadcast %78 : vector<1x1xf32> to vector<1x8xf32>
    %80 = arith.mulf %75, %79 : vector<1x8xf32>
    %cst_40 = arith.constant dense<0.000000e+00> : vector<1x128xf32>
    %81 = tpu.matmul %80, %3, %cst_40 {dimension_numbers = #tpu.dot_dimension_numbers<[1], [1], [0], [0], [0, 0, 1, 0], [], []>} : vector<1x8xf32>, vector<128x8xf32>, vector<1x128xf32> -> vector<1x128xf32>
    %82 = vector.broadcast %81 : vector<1x128xf32> to vector<8x128xf32>
    %83 = arith.addf %1, %82 : vector<8x128xf32>
    %84 = arith.addf %61, %83 : vector<8x128xf32>
    %c0_41 = arith.constant 0 : index
    %c0_42 = arith.constant 0 : index
    %85 = vector.load %arg12[%c0_41, %c0_42] : memref<8x8xf32, #tpu.memory_space<vmem>>, vector<8x8xf32>
    %cst_43 = arith.constant dense<0.000000e+00> : vector<8x128xf32>
    %86 = tpu.matmul %85, %84, %cst_43 {dimension_numbers = #tpu.dot_dimension_numbers<[1], [0], [0], [1], [0, 0, 1, 1], [], []>} : vector<8x8xf32>, vector<8x128xf32>, vector<8x128xf32> -> vector<8x128xf32>
    %cst_44 = arith.constant dense<0.000000e+00> : vector<8xf32>
    %87 = vector.multi_reduction <add>, %86, %cst_44 [1] : vector<8x128xf32> to vector<8xf32>
    %88 = vector.shape_cast %87 : vector<8xf32> to vector<8x1xf32>
    %cst_45 = arith.constant 1.280000e+02 : f32
    %89 = vector.broadcast %cst_45 : f32 to vector<8x1xf32>
    %90 = arith.divf %88, %89 : vector<8x1xf32>
    %91 = arith.mulf %86, %86 : vector<8x128xf32>
    %cst_46 = arith.constant dense<0.000000e+00> : vector<8xf32>
    %92 = vector.multi_reduction <add>, %91, %cst_46 [1] : vector<8x128xf32> to vector<8xf32>
    %93 = vector.shape_cast %92 : vector<8xf32> to vector<8x1xf32>
    %cst_47 = arith.constant 1.280000e+02 : f32
    %94 = vector.broadcast %cst_47 : f32 to vector<8x1xf32>
    %95 = arith.divf %93, %94 : vector<8x1xf32>
    %96 = arith.mulf %90, %90 : vector<8x1xf32>
    %97 = arith.subf %95, %96 : vector<8x1xf32>
    %cst_48 = arith.constant 0.000000e+00 : f32
    %98 = vector.broadcast %cst_48 : f32 to vector<8x1xf32>
    %99 = arith.maximumf %97, %98 : vector<8x1xf32>
    %100 = vector.broadcast %90 : vector<8x1xf32> to vector<8x128xf32>
    %101 = arith.subf %86, %100 : vector<8x128xf32>
    %cst_49 = arith.constant 9.99999974E-6 : f32
    %102 = vector.broadcast %cst_49 : f32 to vector<8x1xf32>
    %103 = arith.addf %99, %102 : vector<8x1xf32>
    %104 = math.rsqrt %103 : vector<8x1xf32>
    %105 = vector.broadcast %104 : vector<8x1xf32> to vector<8x128xf32>
    %106 = arith.mulf %101, %105 : vector<8x128xf32>
    %107 = arith.addf %1, %106 : vector<8x128xf32>
    %cst_50 = arith.constant 0.000000e+00 : f32
    %108 = vector.broadcast %cst_50 : f32 to vector<8x128xf32>
    %109 = arith.maximumf %107, %108 : vector<8x128xf32>
    %c0_51 = arith.constant 0 : index
    %c0_52 = arith.constant 0 : index
    %c0_53 = arith.constant 0 : index
    %110 = vector.load %arg13[%c0_51, %c0_52, %c0_53] : memref<1x8x128xf32, #tpu.memory_space<vmem>>, vector<1x8x128xf32>
    %111 = vector.shape_cast %110 : vector<1x8x128xf32> to vector<8x128xf32>
    %112 = vector.shape_cast %109 : vector<8x128xf32> to vector<1x8x128xf32>
    tpu.vector_store %arg13[%c0_51, %c0_52, %c0_53], %112 {strides = array<i32>} : memref<1x8x128xf32, #tpu.memory_space<vmem>>, vector<1x8x128xf32>,
    return
  }
  func.func @transform_0(%arg0: i32) -> (i32, i32, i32) {
    %c0_i32 = arith.constant 0 : i32
    %c0_i32_0 = arith.constant 0 : i32
    %c0_i32_1 = arith.constant 0 : i32
    return %arg0, %c0_i32, %c0_i32_0 : i32, i32, i32
  }
  func.func @transform_1(%arg0: i32) -> (i32, i32, i32) {
    %c0_i32 = arith.constant 0 : i32
    %c0_i32_0 = arith.constant 0 : i32
    %c0_i32_1 = arith.constant 0 : i32
    return %arg0, %c0_i32, %c0_i32_0 : i32, i32, i32
  }
  func.func @transform_2(%arg0: i32) -> (i32, i32) {
    %c0_i32 = arith.constant 0 : i32
    %c0_i32_0 = arith.constant 0 : i32
    %c0_i32_1 = arith.constant 0 : i32
    return %c0_i32, %c0_i32_0 : i32, i32
  }
  func.func @transform_3(%arg0: i32) -> (i32, i32) {
    %c0_i32 = arith.constant 0 : i32
    %c0_i32_0 = arith.constant 0 : i32
    %c0_i32_1 = arith.constant 0 : i32
    return %c0_i32, %c0_i32_0 : i32, i32
  }
  func.func @transform_4(%arg0: i32) -> (i32, i32) {
    %c0_i32 = arith.constant 0 : i32
    %c0_i32_0 = arith.constant 0 : i32
    %c0_i32_1 = arith.constant 0 : i32
    return %c0_i32, %c0_i32_0 : i32, i32
  }
  func.func @transform_5(%arg0: i32) -> (i32, i32) {
    %c0_i32 = arith.constant 0 : i32
    %c0_i32_0 = arith.constant 0 : i32
    %c0_i32_1 = arith.constant 0 : i32
    return %c0_i32, %c0_i32_0 : i32, i32
  }
  func.func @transform_6(%arg0: i32) -> (i32, i32) {
    %c0_i32 = arith.constant 0 : i32
    %c0_i32_0 = arith.constant 0 : i32
    %c0_i32_1 = arith.constant 0 : i32
    return %c0_i32, %c0_i32_0 : i32, i32
  }
  func.func @transform_7(%arg0: i32) -> (i32, i32) {
    %c0_i32 = arith.constant 0 : i32
    %c0_i32_0 = arith.constant 0 : i32
    %c0_i32_1 = arith.constant 0 : i32
    return %c0_i32, %c0_i32_0 : i32, i32
  }
  func.func @transform_8(%arg0: i32) -> (i32, i32) {
    %c0_i32 = arith.constant 0 : i32
    %c0_i32_0 = arith.constant 0 : i32
    %c0_i32_1 = arith.constant 0 : i32
    return %c0_i32, %c0_i32_0 : i32, i32
  }
  func.func @transform_9(%arg0: i32) -> (i32, i32) {
    %c0_i32 = arith.constant 0 : i32
    %c0_i32_0 = arith.constant 0 : i32
    %c0_i32_1 = arith.constant 0 : i32
    return %c0_i32, %c0_i32_0 : i32, i32
  }
  func.func @transform_10(%arg0: i32) -> (i32, i32) {
    %c0_i32 = arith.constant 0 : i32
    %c0_i32_0 = arith.constant 0 : i32
    %c0_i32_1 = arith.constant 0 : i32
    return %c0_i32, %c0_i32_0 : i32, i32
  }
  func.func @transform_11(%arg0: i32) -> (i32, i32) {
    %c0_i32 = arith.constant 0 : i32
    %c0_i32_0 = arith.constant 0 : i32
    %c0_i32_1 = arith.constant 0 : i32
    return %c0_i32, %c0_i32_0 : i32, i32
  }
  func.func @transform_12(%arg0: i32) -> (i32, i32, i32) {
    %c0_i32 = arith.constant 0 : i32
    %c0_i32_0 = arith.constant 0 : i32
    %c0_i32_1 = arith.constant 0 : i32
    return %arg0, %c0_i32, %c0_i32_0 : i32, i32, i32
  }
}

</mosaic_0001>

<bundles_post_ra>
// kernel: tpu_custom_call.1
= control target key start
LH: loop header
LB: loop body
LE: loop exit
PB: predicated region body
PF: predicated region fallthrough
CT: control target
= control target key end

     0   :  { %s1420_s0 = inlined_call_operand.vmem [shape: f32[2,8,128], index: 0, kind: input, shape index: {}]   ;;  %s1421_s1 = inlined_call_operand.vmem [shape: f32[2,128,8], index: 1, kind: input, shape index: {}]   ;;  %s1422_s2 = inlined_call_operand.vmem [shape: f32[1,8], index: 2, kind: input, shape index: {}]   ;;  %s1423_s3 = inlined_call_operand.<no memory space> [shape: f32[1,1], index: 3, kind: input, shape index: {}]   ;;  %s1424_s4 = inlined_call_operand.vmem [shape: f32[8,2], index: 4, kind: input, shape index: {}]   ;;  %s1425_s5 = inlined_call_operand.vmem [shape: f32[1,2], index: 5, kind: input, shape index: {}]   ;;  %s1426_s6 = inlined_call_operand.vmem [shape: f32[1,2], index: 6, kind: input, shape index: {}]   ;;  %s1427_s7 = inlined_call_operand.vmem [shape: f32[1,2], index: 7, kind: input, shape index: {}]   ;;  %s1428_s8 = inlined_call_operand.vmem [shape: f32[8,2], index: 8, kind: input, shape index: {}]   ;;  %s1429_s9 = inlined_call_operand.vmem [shape: f32[8,1], index: 9, kind: input, shape index: {}]   ;;  %s1430_s10 = inlined_call_operand.vmem [shape: f32[8,8], index: 10, kind: input, shape index: {}]   ;;  %s1431_s11 = inlined_call_operand.vmem [shape: f32[8,8], index: 11, kind: input, shape index: {}]   ;;  %s1432_s12 = inlined_call_operand.hbm [shape: f32[2,8,128], index: 12, kind: output, shape index: {}]  }
   0x1   :  { %1433 = sst [smem:[#allocation6_spill]] %s1420_s0  ;;  %v17_v0 = vstv %s1423_s3 }
   0x2   :  { %1434 = sst [smem:[#allocation7_spill]] %s1421_s1  ;;  %18 = vst [vmem:[#allocation2] sm:$0x1] %v17_v0 }
   0x3   :  { %19 = vsyncpa [#allocation4], 0 }
   0x4   :  { %21 = vsyncpa [#allocation4 + $0x1], 0  ;;  %s1217_s23 = smov 0   ;;  %s1219_s24 = smov 0  }
   0x5   :  { %s1221_s25 = smov 0   ;;  %s1223_s26 = smov 0  }
   0x6 LB: > { %s1238_s3 = sadd.s32 4294967295, %s1143_s26   ;;  %s929_s27 = sadd.s32 4294967294, %s1143_s26   ;;  %s1143_s26 = sphi %s1223_s26, %s1442_s26   ;;  %s1139_s25 = sphi %s1221_s25, %s1441_s25   ;;  %s1135_s24 = sphi %s1219_s24, %s1440_s24   ;;  %s1131_s23 = sphi %s1217_s23, %s1439_s23  }
   0x7   : > { %s1242_s28 = sadd.s32 1, %s1143_s26   ;;  %s296_s29 = sadd.s32 1, %s1139_s25 }
   0x8   : > { %s293_s30 = ssub.s32 %s1143_s26, %s1242_s28  ;;  %p306_p0 = scmp.ne.s32.totalorder %s1139_s25, %s1135_s24 }
   0x9   : > { %p294_p1 = scmp.eq.s32.totalorder %s293_s30, 0  ;;  %p307_p2 = scmp.eq.s32.totalorder %s1238_s3, 1 }
   0xa   : > { %p312_p3 = scmp.ne.s32.totalorder %s1135_s24, %s1131_s23  ;;  %p313_p4 = scmp.eq.s32.totalorder %s929_s27, 1 }
   0xb   : > { %s1253_s13 = scalar_select %p294_p1, %s1139_s25, %s296_s29  }
   0xc   : > { %p1255_p5 = por %p307_p2, %p306_p0  ;;  %p1259_p6 = por %p313_p4, %p312_p3 }
   0xd   : > { %p932_p7 = scmp.ge.s32.totalorder %s1143_s26, 1  ;;  %p376_p8 = scmp.lt.s32.totalorder %s1143_s26, 3 }
   0xf   : > { %p377_p9 = pnand %p932_p7, %p376_p8 }
  0x10   : > { %p422_p10 = scmp.lt.s32.totalorder (!%p377_p9), %s1238_s3, 1  ;;  %s1437_s0 = sld [smem:[#allocation6_spill]] (!%p377_p9) }
  0x11   : > { %380 = sbr.rel (%p377_p9) target bundleno = 1656 (0x678), region = 68  ;;  %s1438_s1 = sld [smem:[#allocation7_spill]] (!%p377_p9) }
  0x12   : > { %s419_s27 = sand.u32 (!%p377_p9), 1, %s1135_s24  }
  0x13   : > { %s933_s29 = sshll.u32 (!%p377_p9), %s419_s27, 3  ;;  %s845_s21 = scalar_lea.sflag (!%p377_p9), [#allocation4], %s419_s27 }
  0x16   : > { %v1145_v1 = vmov 0.0   ;;  %vm1146_vm0 = vmmov 0   ;;  %v449_v2 = vld [vmem:[#allocation2] sm:$0x1]  ;;  %s1270_s16 = scalar_select %p422_p10, %s1238_s3, 1  ;;  %v1147_v3 = vmov 0   ;;  %v455_v6 = vlaneseq }
  0x17   : > { %982 = vmatprep.subr.mxu0 %v1145_v1  ;;  %984 = vmatprep.mubr.msk.f32.mxu0 %vm1146_vm0, %v1145_v1  ;;  %v448_v4 = vld [vmem:[%s1422_s2] sm:$0x1]  ;;  %vm459_vm1 = vcmask 64512   ;;  %vm533_vm2 = vcmask 1040384   ;;  %vm554_vm3 = vcmask 15360   ;;  %vm564_vm4 = vcmask 8192  }
  0x18   : > { %1069 = vset.pattern.permute.xlu0 %v1147_v3  ;;  %987 = vmatprep.subr.mxu1 %v1145_v1  ;;  %s934_s17 = sshll.u32 %s1270_s16, 3  ;;  %v456_v7 = vshrl.u32 %v455_v6, 7  ;;  %v606_v21 = vld [vmem:[%s1430_s10] sm:$0xff]  ;;  %s960_s30 = sshll.u32 %s1270_s16, 7 }
  0x19   : > { %452 = vperm.xlu0 %1069, %v449_v2   ;;  %1019 = vmatprep.mubr.msk.f32.mxu1 %vm1146_vm0, %v1145_v1  ;;  %s425_s20 = scalar_lea.vmem %s1437_s0, %s934_s17  ;;  %s1304_s19 = scalar_lea.vmem %s1438_s1, %s960_s30  ;;  %v552_v48 = vld [vmem:[%s1424_s4] sm:$0xff] }
  0x1a   : > { %1070 = vset.pattern.permute.xlu1 %v1147_v3  ;;  %v1282_v5 = vld [vmem:[%s425_s20] sm:$0xff]  ;;  %v1289_v8 = vsub.s32 0, %v456_v7  ;;  %v447_v37 = vld [vmem:[%s1304_s19 + $0x78] sm:$0xff]  ;;  %v446_v38 = vld [vmem:[%s1304_s19 + $0x70] sm:$0xff]  ;;  %s957_s30 = sshll.u32 %s1238_s3, 7  ;;  %s421_s17 = scalar_lea.vmem [#allocation3], %s933_s29 }
  0x1b   : > { %983 = vmatpush3.msra.mxu0 %v1282_v5  ;;  %988 = vmatpush3.xpose.msk.msra.mxu1 %vm459_vm1, %v447_v37  ;;  %v445_v39 = vld [vmem:[%s1304_s19 + $0x68] sm:$0xff]  ;;  %v444_v40 = vld [vmem:[%s1304_s19 + $0x60] sm:$0xff]  ;;  %v443_v41 = vld [vmem:[%s1304_s19 + $0x58] sm:$0xff]  ;;  %s858_s18 = sshll.u32 %s421_s17, 4  ;;  %s856_s20 = scalar_lea.hbm %s1432_s12, %s957_s30  ;;  %s859_s18 = int_to_ptr.vmem [resolvable:$true] %s858_s18 }
  0x1c   : > { %985 = vmatmul.mubr.msk.f32.vlgmr.msra.gmra.mxu0 %vm459_vm1, %v448_v4  ;;  %1022 = vmatprep.subr.mxu0 %v1145_v1  ;;  %v442_v42 = vld [vmem:[%s1304_s19 + $0x50] sm:$0xff]  ;;  %v441_v43 = vld [vmem:[%s1304_s19 + $0x48] sm:$0xff]  ;;  %v440_v44 = vld [vmem:[%s1304_s19 + $0x40] sm:$0xff]  ;;  %s1083_s22 = scalar_lea.vmem %s859_s18, 128  ;;  %s1148_s0 = smov [#allocation3]  }
  0x1d   : > { %1024 = vmatprep.mubr.msk.f32.mxu0 %vm1146_vm0, %v1145_v1  ;;  %989 = vmatprep.subr.mxu1 %v1145_v1  ;;  %v439_v45 = vld [vmem:[%s1304_s19 + $0x38] sm:$0xff]  ;;  %v438_v46 = vld [vmem:[%s1304_s19 + $0x30] sm:$0xff]  ;;  %v437_v47 = vld [vmem:[%s1304_s19 + $0x28] sm:$0xff]  ;;  %p1084_p11 = scmp.ne.s32.totalorder %s859_s18, %s1083_s22  ;;  %s1087_s1 = sshll.u32 %s1148_s0, 4  ;;  %s1088_s1 = int_to_ptr.vmem [resolvable:$false] %s1087_s1 }
  0x1e   : > { %v562_v60 = vld [vmem:[%s1425_s5] sm:$0x1]  ;;  %v435_v4 = vld [vmem:[%s1304_s19 + $0x18] sm:$0xff]  ;;  %v434_v6 = vld [vmem:[%s1304_s19 + $0x10] sm:$0xff]  ;;  %s1089_s3 = scalar_lea.vmem %s1088_s1, 256  ;;  %p1090_p0 = scmp.lt.s32.totalorder %s859_s18, %s1088_s1 }
  0x1f   : > { %990 = vmatpush3.xpose.msk.msra.mxu1 %vm459_vm1, %v446_v38  ;;  %v436_v3 = vld [vmem:[%s1304_s19 + $0x20] sm:$0xff]  ;;  %v433_v7 = vld [vmem:[%s1304_s19 + $0x8] sm:$0xff]  ;;  %p1085_p12 = pnand %p1084_p11, %p1255_p5  ;;  %p1091_p1 = scmp.lt.s32.totalorder %s1089_s3, %s1083_s22 }
  0x20   : > { %991 = vmatprep.subr.mxu1 %v1145_v1 }
  0x21   : > { %p1086_p13 = pneg %p1085_p12  ;;  %p1092_p2 = por %p1091_p1, %p1090_p0 }
  0x23   : > { %992 = vmatpush3.xpose.msk.msra.mxu1 %vm459_vm1, %v445_v39  ;;  %p1093_p3 = pnand %p1092_p2, %p1086_p13 }
  0x24   : > { %993 = vmatprep.subr.mxu1 %v1145_v1 }
  0x27   : > { %994 = vmatpush3.xpose.msk.msra.mxu1 %vm459_vm1, %v444_v40 }
  0x28   : > { %995 = vmatprep.subr.mxu1 %v1145_v1 }
  0x2b   : > { %996 = vmatpush3.xpose.msk.msra.mxu1 %vm459_vm1, %v443_v41 }
  0x2c   : > { %997 = vmatprep.subr.mxu1 %v1145_v1 }
  0x2f   : > { %998 = vmatpush3.xpose.msk.msra.mxu1 %vm459_vm1, %v442_v42  ;;  %v753_v42 = vld [vmem:[%s1431_s11] sm:$0xff] }
  0x30   : > { %999 = vmatprep.subr.mxu1 %v1145_v1 }
  0x33   : > { %1000 = vmatpush3.xpose.msk.msra.mxu1 %vm459_vm1, %v441_v43 }
  0x34   : > { %1001 = vmatprep.subr.mxu1 %v1145_v1 }
  0x37   : > { %1002 = vmatpush3.xpose.msk.msra.mxu1 %vm459_vm1, %v440_v44 }
  0x38   : > { %1003 = vmatprep.subr.mxu1 %v1145_v1 }
  0x3b   : > { %1004 = vmatpush3.xpose.msk.msra.mxu1 %vm459_vm1, %v439_v45 }
  0x3c   : > { %1005 = vmatprep.subr.mxu1 %v1145_v1 }
  0x3f   : > { %1006 = vmatpush3.xpose.msk.msra.mxu1 %vm459_vm1, %v438_v46 }
  0x40   : > { %1007 = vmatprep.subr.mxu1 %v1145_v1 }
  0x43   : > { %1008 = vmatpush3.xpose.msk.msra.mxu1 %vm459_vm1, %v437_v47 }
  0x44   : > { %1009 = vmatprep.subr.mxu1 %v1145_v1 }
  0x47   : > { %1010 = vmatpush3.xpose.msk.msra.mxu1 %vm459_vm1, %v436_v3 }
  0x48   : > { %1011 = vmatprep.subr.mxu1 %v1145_v1 }
  0x4b   : > { %1012 = vmatpush3.xpose.msk.msra.mxu1 %vm459_vm1, %v435_v4 }
  0x4c   : > { %1013 = vmatprep.subr.mxu1 %v1145_v1 }
  0x4f   : > { %1014 = vmatpush3.xpose.msk.msra.mxu1 %vm459_vm1, %v434_v6 }
  0x50   : > { %1015 = vmatprep.subr.mxu1 %v1145_v1 }
  0x53   : > { %1016 = vmatpush3.xpose.msk.msra.mxu1 %vm459_vm1, %v433_v7 }
  0x54   : > { %1017 = vmatprep.subr.mxu1 %v1145_v1 }
  0x94   : > { %v453_v9 = vpop.permute.xlu0 %452 }
  0x95   : > { %v458_v10 = vrot.slane %v453_v9, %v1289_v8  ;;  %v432_v9 = vld [vmem:[%s1304_s19] sm:$0xff] }
  0x96   : > { %1018 = vmatpush3.xpose.msk.msra.mxu1 %vm459_vm1, %v432_v9 }
  0xdc   : > { %v529_v11 = vpop.f32.mrf.mxu0 }
  0xdd   : > { %v530_v12 = vadd.f32 %v529_v11, %v458_v10 }
  0xde   : > { %v986_v13 = vpop.f32.mrf.mxu0 }
  0xdf   : > { %v534_v14 = vsel %vm533_vm2, %v530_v12, -inf }
  0xe0   : > { %535 = vmax.xlane.f32.xlu0 %v534_v14 }
 0x169   : > { %v536_v15 = vpop.xlane.xlu0 %535 }
 0x16a   : > { %v537_v16 = vsub.f32 %v530_v12, %v536_v15 }
 0x16c   : > { %v538_v17 = vmul.f32 1.442695, %v537_v16 }
 0x16e   : > { %1071 = vpow2.f32 %v538_v17 }
 0x17b   : > { %v1072_v18 = vpop.eup %1071 }
 0x17c   : > { %v540_v19 = vsel %vm533_vm2, %v1072_v18, 0.0 }
 0x17d   : > { %541 = vadd.xlane.f32.xlu1 %v540_v19 }
 0x181   : > { %602 = vadd.xlane.f32.xlu1 %v1282_v5 }
 0x206   : > { %v542_v20 = vpop.xlane.xlu1 %541 }
 0x207   : > { %1073 = vrcp.f32 %v542_v20 }
 0x20a   : > { %v603_v22 = vpop.xlane.xlu1 %602 }
 0x20b   : > { %v605_v23 = vmul.f32 0.0078125, %v603_v22 }
 0x20d   : > { %v607_v24 = vmul.f32 %v606_v21, %v605_v23  ;;  %v579_v21 = vld [vmem:[%s1426_s6] sm:$0x1] }
 0x20e   : > { %v581_v23 = vld [vmem:[%s1427_s7] sm:$0x1] }
 0x20f   : > { %v608_v25 = vsel %vm459_vm1, %v607_v24, 0.0 }
 0x210   : > { %v609_v26 = vrot.slane %v608_v25, 4 }
 0x212   : > { %v610_v27 = vadd.f32 %v609_v26, %v608_v25 }
 0x214   : > { %v1074_v28 = vpop.eup %1073  ;;  %v611_v29 = vrot.slane %v610_v27, 2 }
 0x215   : > { %v544_v30 = vmul.f32 %v1074_v28, %v1072_v18 }
 0x216   : > { %v612_v31 = vadd.f32 %v611_v29, %v610_v27  ;;  %v584_v27 = vld [vmem:[%s1428_s8] sm:$0xff] }
 0x217   : > { %v548_v32 = vrot.slane %v544_v30, %v1289_v8 }
 0x218   : > { %v613_v33 = vrot.slane %v612_v31, 1 }
 0x219   : > { %v549_v34 = vmul.f32 %v548_v32, %v1282_v5 }
 0x21a   : > { %v614_v35 = vadd.f32 %v613_v33, %v612_v31  ;;  %v593_v33 = vld [vmem:[%s1429_s9] sm:$0xff] }
 0x21b   : > { %550 = vadd.xlane.f32.xlu1 %v549_v34 }
 0x21c   : > { %v615_v36 = vsel %vm459_vm1, %v614_v35, -inf }
 0x21f   : > { %616 = vmax.xlane.f32.xlu1 %v615_v36 }
 0x2a4   : > { %v551_v49 = vpop.xlane.xlu1 %550 }
 0x2a5   : > { %v553_v50 = vmul.f32 %v552_v48, %v551_v49 }
 0x2a7   : > { %v555_v51 = vsel %vm554_vm3, %v553_v50, 0.0 }
 0x2a8   : > { %v556_v52 = vrot.slane %v555_v51, 4  ;;  %v617_v53 = vpop.xlane.xlu1 %616 }
 0x2a9   : > { %v618_v54 = vsub.f32 %v614_v35, %v617_v53 }
 0x2aa   : > { %v557_v55 = vadd.f32 %v556_v52, %v555_v51 }
 0x2ab   : > { %v619_v56 = vmul.f32 1.442695, %v618_v54 }
 0x2ac   : > { %v558_v57 = vrot.slane %v557_v55, 2 }
 0x2ad   : > { %1075 = vpow2.f32 %v619_v56 }
 0x2ae   : > { %v559_v58 = vadd.f32 %v558_v57, %v557_v55 }
 0x2b0   : > { %v560_v59 = vrot.slane %v559_v58, 1 }
 0x2b2   : > { %v561_v61 = vadd.f32 %v560_v59, %v559_v58 }
 0x2b4   : > { %v563_v62 = vadd.f32 %v562_v60, %v561_v61 }
 0x2b6   : > { %v565_v63 = vsel %vm564_vm4, %v563_v62, 0.0 }
 0x2b7   : > { %566 = vadd.xlane.f32.xlu1 %v565_v63 }
 0x2ba   : > { %v1076_v0 = vpop.eup %1075 }
 0x2bb   : > { %v621_v2 = vsel %vm459_vm1, %v1076_v0, 0.0 }
 0x2bc   : > { %622 = vadd.xlane.f32.xlu1 %v621_v2 }
 0x340   : > { %v567_v10 = vpop.xlane.xlu1 %566 }
 0x341   : > { %v569_v11 = vmul.f32 0.5, %v567_v10 }
 0x343   : > { %v570_v12 = vsub.f32 %v563_v62, %v569_v11 }
 0x345   : > { %v623_v13 = vpop.xlane.xlu1 %622  ;;  %v571_v14 = vmul.f32 %v570_v12, %v570_v12 }
 0x346   : > { %1077 = vrcp.f32 %v623_v13 }
 0x347   : > { %v572_v15 = vsel %vm564_vm4, %v571_v14, 0.0 }
 0x348   : > { %573 = vadd.xlane.f32.xlu1 %v572_v15 }
 0x353   : > { %v1078_v16 = vpop.eup %1077 }
 0x354   : > { %v625_v17 = vmul.f32 %v1078_v16, %v1076_v0 }
 0x356   : > { %1020 = vmatmul.mubr.msk.f32.vlgmr.msra.gmra.mxu1 %vm459_vm1, %v625_v17 }
 0x3d1   : > { %v574_v18 = vpop.xlane.xlu1 %573 }
 0x3d2   : > { %v575_v19 = vmul.f32 0.5, %v574_v18 }
 0x3d4   : > { %v576_v20 = vadd.f32 1e-05, %v575_v19 }
 0x3d6   : > { %1079 = vrsqrt.f32 %v576_v20 }
 0x3e3   : > { %v1080_v1 = vpop.eup %1079 }
 0x3e4   : > { %v578_v22 = vmul.f32 %v1080_v1, %v570_v12 }
 0x3e6   : > { %v580_v24 = vmul.f32 %v579_v21, %v578_v22 }
 0x3e8   : > { %v582_v25 = vadd.f32 %v581_v23, %v580_v24 }
 0x3ea   : > { %v583_v26 = vmax.f32 %v582_v25, 0.0 }
 0x3ec   : > { %v588_v28 = vrot.slane %v583_v26, %v1289_v8 }
 0x3ee   : > { %v589_v29 = vmul.f32 %v588_v28, %v584_v27 }
 0x3f0   : > { %v590_v30 = vsel %vm554_vm3, %v589_v29, 0.0 }
 0x3f1   : > { %591 = vadd.xlane.f32.xlu1 %v590_v30 }
 0x416   : > { %v743_v31 = vpop.f32.mrf.mxu1 }
 0x417   : > { %v750_v36 = vrot.slane %v743_v31, %v1289_v8 }
 0x418   : > { %v1021_v32 = vpop.f32.mrf.mxu1 }
 0x419   : > { %v751_v39 = vadd.f32 %v750_v36, %v1282_v5 }
 0x47a   : > { %v592_v34 = vpop.xlane.xlu1 %591 }
 0x47b   : > { %v594_v35 = vadd.f32 %v593_v33, %v592_v34 }
 0x47d   : > { %597 = vperm.xlu1 %1070, %v594_v35  }
 0x4f8   : > { %v598_v37 = vpop.permute.xlu1 %597 }
 0x4f9   : > { %v600_v38 = vadd.f32 %v598_v37, %v1282_v5 }
 0x4fb   : > { %v601_v40 = vmax.f32 %v600_v38, 0.0 }
 0x4fd   : > { %v752_v41 = vadd.f32 %v751_v39, %v601_v40 }
 0x4ff   : > { %1023 = vmatpush3.msra.mxu0 %v752_v41 }
 0x500   : > { %1025 = vmatmul.mubr.msk.f32.vlgmr.msra.gmra.mxu0 %vm459_vm1, %v753_v42 }
 0x5c0   : > { %v823_v43 = vpop.f32.mrf.mxu0 }
 0x5c1   : > { %827 = vadd.xlane.f32.xlu0 %v823_v43  ;;  %v830_v45 = vmul.f32 %v823_v43, %v823_v43 }
 0x5c2   : > { %v1026_v44 = vpop.f32.mrf.mxu0 }
 0x5c5   : > { %831 = vadd.xlane.f32.xlu0 %v830_v45 }
 0x64a   : > { %v828_v8 = vpop.xlane.xlu0 %827 }
 0x64b   : > { %v829_v46 = vmul.f32 0.0078125, %v828_v8 }
 0x64d   : > { %v834_v48 = vmul.f32 %v829_v46, %v829_v46  ;;  %v837_v53 = vsub.f32 %v823_v43, %v829_v46 }
 0x64e   : > { %v832_v47 = vpop.xlane.xlu0 %831 }
 0x64f   : > { %v833_v49 = vmul.f32 0.0078125, %v832_v47 }
 0x651   : > { %v835_v50 = vsub.f32 %v833_v49, %v834_v48 }
 0x653   : > { %v836_v51 = vmax.f32 %v835_v50, 0.0 }
 0x655   : > { %v838_v52 = vadd.f32 1e-05, %v836_v51 }
 0x657   : > { %1081 = vrsqrt.f32 %v838_v52 }
 0x664   : > { %v1082_v54 = vpop.eup %1081 }
 0x665   : > { %v840_v55 = vmul.f32 %v1082_v54, %v837_v53 }
 0x667   : > { %v841_v56 = vadd.f32 %v840_v55, %v1282_v5 }
 0x669   : > { %v842_v57 = vmax.f32 %v841_v56, 0.0 }
 0x66b   : > { %843 = vst [vmem:[%s421_s17] sm:$0xff] %v842_v57 }
 0x66c   : > { %1096 = shalt.err (!%p1093_p3)
}
 0x66d   : > { %s1097_s29 = scalar_lea.hbm %s856_s20, 128  ;;  %s1101_s17 = scalar_lea.hbm %s1432_s12, 256 }
 0x66e   : > { %p1098_p4 = scmp.ne.s32.totalorder %s856_s20, %s1097_s29  ;;  %p1102_p9 = scmp.lt.s32.totalorder %s856_s20, %s1432_s12 }
 0x66f   : > { %p1103_p10 = scmp.lt.s32.totalorder %s1101_s17, %s1097_s29 }
 0x670   : > { %p1099_p7 = pnand %p1098_p4, %p1255_p5 }
 0x671   : > { %p1104_p11 = por %p1103_p10, %p1102_p9 }
 0x672   : > { %p1100_p8 = pneg %p1099_p7 }
 0x674   : > { %p1105_p12 = pnand %p1104_p11, %p1100_p8 }
 0x676   : > { %1108 = shalt.err (!%p1105_p12)
}
 0x677   : > { %1027 = dma.vmem_to_hbm [thread:$0]  (%p1255_p5), %s859_s18, 128, %s856_s20, %s845_s21  }
 0x678 PF: > { %p1033_p13 = scmp.ge.s32.totalorder %s1143_s26, 2  ;;  %s870_s0 = sand.u32 1, %s1131_s23  }
 0x679   : > { %s871_s1 = scalar_lea.sflag [#allocation4], %s870_s0 }
 0x67a   : > { %p1030_p0 = pnand %p1033_p13, %p1259_p6 }
 0x67c   : > { %p1031_p1 = pneg %p1030_p0 }
 0x67e   : > { %1126 = dma.done.wait (%p1031_p1), %s871_s1, 128  }
 0x67f   : > { %1128 = vsyncadd (%p1031_p1), %s871_s1, 4294967168  ;;  %p24_p2 = scmp.ge.s32.totalorder %s1242_s28, 4   ;;  %s1439_s23 = smov %s1135_s24 }
 0x680   : > { %s1440_s24 = smov %s1139_s25  ;;  %s1441_s25 = smov %s1253_s13 }
 0x681   : > { %s1442_s26 = smov %s1242_s28  ;;  %26 = sbr.rel (!%p24_p2) target bundleno = 6 (0x6), region = 106 }
 0x686   :  { %876 = vsyncpa [#allocation4], 1 }
 0x687   :  { %878 = vsyncpa [#allocation4 + $0x1], 1 }

</bundles_post_ra>
